<compile_context>
chip_gen: v7x
topology: tpu7x:2x2x1
jax: 0.10.0
libtpu: 0.0.40
codegen_flags: <defaults>
</compile_context>

<pallas_src>
import jax
import jax.numpy as jnp
from jax import lax
from jax.experimental import pallas as pl
from jax.experimental.pallas import tpu as pltpu


def _round_up(x, m):
    return ((x + m - 1) // m) * m


def adapter_kernel(x_ref, w1_ref, w2_ref, o_ref):
    # x_ref : (block_m, c_in)        lane-dense rows
    # w1_ref: (hidden, c_in)         torch Linear weight layout (out, in)
    # w2_ref: (c_in, hidden)
    x = x_ref[...]

    # h = ReLU(x @ W1.T)  -> (block_m, hidden)
    h = lax.dot_general(x, w1_ref[...], (((1,), (1,)), ((), ())),
                        preferred_element_type=jnp.float32)
    h = jnp.maximum(h, 0.0)

    # y = ReLU(h @ W2.T)  -> (block_m, c_in), lane-dense output store
    y = lax.dot_general(h, w2_ref[...], (((1,), (1,)), ((), ())),
                        preferred_element_type=jnp.float32)
    o_ref[...] = jnp.maximum(y, 0.0).astype(o_ref.dtype)


def adapter(x, w1, w2, *, block_m=512):
    """Apply the Adapter MLP to x of shape (..., c_in)."""
    orig_shape = x.shape
    c_in = orig_shape[-1]
    hidden = w1.shape[0]
    assert w1.shape == (hidden, c_in)
    assert w2.shape == (c_in, hidden)

    # Flatten all leading dims into one lane-dense row axis.
    x2 = x.reshape(-1, c_in)
    m = x2.shape[0]

    # Row-block size: multiple of 8 (sublane), capped at block_m, no bigger
    # than needed for small inputs.
    bm = min(block_m, _round_up(m, 8))
    m_pad = _round_up(m, bm)
    if m_pad != m:
        # Zero rows are harmless: ReLU(0 @ W) = 0; sliced off below.
        x2 = jnp.pad(x2, ((0, m_pad - m), (0, 0)))

    grid = (m_pad // bm,)
    out = pl.pallas_call(
        adapter_kernel,
        out_shape=jax.ShapeDtypeStruct((m_pad, c_in), x.dtype),
        grid=grid,
        in_specs=[
            pl.BlockSpec((bm, c_in), lambda i: (i, 0)),      # x rows: streamed
            pl.BlockSpec((hidden, c_in), lambda i: (0, 0)),  # W1: VMEM-resident
            pl.BlockSpec((c_in, hidden), lambda i: (0, 0)),  # W2: VMEM-resident
        ],
        out_specs=pl.BlockSpec((bm, c_in), lambda i: (i, 0)),
        compiler_params=pltpu.CompilerParams(
            dimension_semantics=("parallel",)),
    )(x2, w1, w2)

    if m_pad != m:
        out = out[:m]
    return out.reshape(orig_shape)


def init_params(key, c_in, reduction=4):
    hidden = c_in // reduction
    k1, k2 = jax.random.split(key)
    # Kaiming-uniform-ish init; the exact distribution is irrelevant here.
    bound1 = 1.0 / (c_in ** 0.5)
    bound2 = 1.0 / (hidden ** 0.5)
    w1 = jax.random.uniform(k1, (hidden, c_in), jnp.float32, -bound1, bound1)
    w2 = jax.random.uniform(k2, (c_in, hidden), jnp.float32, -bound2, bound2)
    return w1, w2


def adapter_reference(x, w1, w2):
    """Plain-JAX reference mirroring the PyTorch module."""
    h = jnp.maximum(jnp.einsum('...i,hi->...h', x, w1), 0.0)
    y = jnp.maximum(jnp.einsum('...h,ih->...i', h, w2), 0.0)
    return y


if __name__ == "__main__":
    # Small but TPU-friendly shapes: c_in = 128 (lane-dense), reduction = 4.
    B, S, C_IN, REDUCTION = 4, 64, 128, 4
    key = jax.random.PRNGKey(0)
    kx, kp = jax.random.split(key)

    x = jax.random.normal(kx, (B, S, C_IN), jnp.float32)
    w1, w2 = init_params(kp, C_IN, REDUCTION)

    out = adapter(x, w1, w2)
    out = jax.block_until_ready(out)

    ref = adapter_reference(x, w1, w2)
    assert out.shape == x.shape
    assert jnp.allclose(out, ref, atol=1e-3, rtol=1e-3), "mismatch vs reference"

    print("KERNEL_OK")
</pallas_src>

<mosaic_0001>
module attributes {stable_mosaic.version = 11 : i64} {
  func.func @adapter_kernel(%arg0: i32, %arg1: memref<256x128xf32, #tpu.memory_space<vmem>>, %arg2: memref<32x128xf32, #tpu.memory_space<vmem>>, %arg3: memref<128x32xf32, #tpu.memory_space<vmem>>, %arg4: memref<256x128xf32, #tpu.memory_space<vmem>>) attributes {dimension_semantics = [#tpu.dimension_semantics<parallel>], iteration_bounds = array<i64: 1>, scalar_prefetch = 0 : i64, scratch_operands = 0 : i64, tpu.core_type = #tpu.core_type<tc>, window_params = [{transform_indices = @transform_0, window_bounds = array<i64: 256, 128>}, {pipeline_mode = #tpu.pipeline_mode<synchronous>, transform_indices = @transform_1, window_bounds = array<i64: 32, 128>}, {pipeline_mode = #tpu.pipeline_mode<synchronous>, transform_indices = @transform_2, window_bounds = array<i64: 128, 32>}, {transform_indices = @transform_3, window_bounds = array<i64: 256, 128>}]} {
    %c0 = arith.constant 0 : index
    %c0_0 = arith.constant 0 : index
    %0 = vector.load %arg1[%c0, %c0_0] : memref<256x128xf32, #tpu.memory_space<vmem>>, vector<256x128xf32>
    %c0_1 = arith.constant 0 : index
    %c0_2 = arith.constant 0 : index
    %1 = vector.load %arg2[%c0_1, %c0_2] : memref<32x128xf32, #tpu.memory_space<vmem>>, vector<32x128xf32>
    %cst = arith.constant dense<0.000000e+00> : vector<256x32xf32>
    %2 = tpu.matmul %0, %1, %cst {dimension_numbers = #tpu.dot_dimension_numbers<[1], [1], [0], [0], [0, 0, 1, 0], [], []>} : vector<256x128xf32>, vector<32x128xf32>, vector<256x32xf32> -> vector<256x32xf32>
    %cst_3 = arith.constant 0.000000e+00 : f32
    %3 = vector.broadcast %cst_3 : f32 to vector<256x32xf32>
    %4 = arith.maximumf %2, %3 : vector<256x32xf32>
    %c0_4 = arith.constant 0 : index
    %c0_5 = arith.constant 0 : index
    %5 = vector.load %arg3[%c0_4, %c0_5] : memref<128x32xf32, #tpu.memory_space<vmem>>, vector<128x32xf32>
    %cst_6 = arith.constant dense<0.000000e+00> : vector<256x128xf32>
    %6 = tpu.matmul %4, %5, %cst_6 {dimension_numbers = #tpu.dot_dimension_numbers<[1], [1], [0], [0], [0, 0, 1, 0], [], []>} : vector<256x32xf32>, vector<128x32xf32>, vector<256x128xf32> -> vector<256x128xf32>
    %cst_7 = arith.constant 0.000000e+00 : f32
    %7 = vector.broadcast %cst_7 : f32 to vector<256x128xf32>
    %8 = arith.maximumf %6, %7 : vector<256x128xf32>
    %c0_8 = arith.constant 0 : index
    %c0_9 = arith.constant 0 : index
    %9 = vector.load %arg4[%c0_8, %c0_9] : memref<256x128xf32, #tpu.memory_space<vmem>>, vector<256x128xf32>
    tpu.vector_store %arg4[%c0_8, %c0_9], %8 {strides = array<i32>} : memref<256x128xf32, #tpu.memory_space<vmem>>, vector<256x128xf32>,
    return
  }
  func.func @transform_0(%arg0: i32) -> (i32, i32) {
    %c0_i32 = arith.constant 0 : i32
    %c0_i32_0 = arith.constant 0 : i32
    return %arg0, %c0_i32 : i32, i32
  }
  func.func @transform_1(%arg0: i32) -> (i32, i32) {
    %c0_i32 = arith.constant 0 : i32
    %c0_i32_0 = arith.constant 0 : i32
    %c0_i32_1 = arith.constant 0 : i32
    return %c0_i32, %c0_i32_0 : i32, i32
  }
  func.func @transform_2(%arg0: i32) -> (i32, i32) {
    %c0_i32 = arith.constant 0 : i32
    %c0_i32_0 = arith.constant 0 : i32
    %c0_i32_1 = arith.constant 0 : i32
    return %c0_i32, %c0_i32_0 : i32, i32
  }
  func.func @transform_3(%arg0: i32) -> (i32, i32) {
    %c0_i32 = arith.constant 0 : i32
    %c0_i32_0 = arith.constant 0 : i32
    return %arg0, %c0_i32 : i32, i32
  }
}

</mosaic_0001>

<bundles_post_ra>
// kernel: tpu_custom_call.1
= control target key start
LH: loop header
LB: loop body
LE: loop exit
PB: predicated region body
PF: predicated region fallthrough
CT: control target
= control target key end

     0   :  { %8 = vsyncpa [#allocation3], 0  ;;  %s1397_s0 = inlined_call_operand.hbm [shape: f32[256,128], index: 0, kind: input, shape index: {}]   ;;  %s1398_s1 = inlined_call_operand.vmem [shape: f32[32,128], index: 1, kind: input, shape index: {}]   ;;  %s1399_s2 = inlined_call_operand.vmem [shape: f32[128,32], index: 2, kind: input, shape index: {}]   ;;  %s1400_s3 = inlined_call_operand.hbm [shape: f32[256,128], index: 3, kind: output, shape index: {}]  }
   0x1   :  { %9 = vsyncpa [#allocation4], 0  ;;  %s1181_s12 = smov [#allocation2]   ;;  %s1133_s16 = scalar_lea.hbm %s1397_s0, 4096 }
   0x2   :  { %s15_s13 = sshll.u32 %s1181_s12, 4  ;;  %p1134_p0 = scmp.ne.s32.totalorder %s1397_s0, %s1133_s16  ;;  %s16_s13 = int_to_ptr.vmem [resolvable:$true] %s15_s13 }
   0x3   :  { %p1137_p1 = scmp.lt.u32.totalorder %s1133_s16, %s1397_s0 }
   0x5   :  { %p1139_p2 = pnand %p1137_p1, %p1134_p0 }
   0x7   :  { %1142 = shalt.err (!%p1139_p2)
}
   0x8   :  { %s1143_s21 = scalar_lea.vmem %s16_s13, 4096  ;;  %p1148_p4 = scmp.lt.s32.totalorder %s16_s13, %s16_s13 }
   0x9   :  { %p1144_p3 = scmp.ne.s32.totalorder %s16_s13, %s1143_s21  ;;  %p1149_p5 = scmp.lt.s32.totalorder %s1143_s21, %s1143_s21 }
   0xb   :  { %p1150_p6 = por %p1149_p5, %p1148_p4 }
   0xd   :  { %p1151_p7 = pnand %p1150_p6, %p1144_p3 }
   0xf   :  { %1154 = shalt.err (!%p1151_p7)
}
  0x10   :  { %s1182_s22 = smov 128   ;;  %s1183_s23 = smov 8  }
  0x11   :  { %21 = dma.hbm_to_vmem [thread:$0]  %s1397_s0, 4096, %s16_s13, [#allocation3], %s1182_s22, %s1182_s22, %s1183_s23  }
  0x12   :  { %1177 = dma.done.wait [#allocation3], 4096  }
  0x13   :  { %1178 = vsyncadd [#allocation3], 4294963200  ;;  %v61_v0 = vld [vmem:[%s1398_s1] sm:$0xff]  ;;  %v62_v1 = vld [vmem:[%s1398_s1 + $0x8] sm:$0xff]  ;;  %vm338_vm0 = vcmask 261120  }
  0x14   :  { %v63_v2 = vld [vmem:[%s1398_s1 + $0x10] sm:$0xff]  ;;  %v1057_v3 = vpack.c.bf16 %v62_v1, %v61_v0  ;;  %v64_v4 = vld [vmem:[%s1398_s1 + $0x18] sm:$0xff]  ;;  %v29_v5 = vld [vmem:[#allocation2] sm:$0xff] }
  0x15   :  { %v1061_v6 = vpack.c.bf16 %v64_v4, %v63_v2  ;;  %929 = vmatprep.mubr.f32.mxu0 %v29_v5  ;;  %vm1234_vm1 = vmpackc.low %vm338_vm0, %vm338_vm0  ;;  %v322_v8 = vld [vmem:[%s1399_s2] sm:$0xff]  ;;  %v323_v9 = vld [vmem:[%s1399_s2 + $0x8] sm:$0xff] }
  0x16   :  { %1058 = vmatprep.subr.bf16.mxu0 %v1057_v3  ;;  %v324_v10 = vld [vmem:[%s1399_s2 + $0x10] sm:$0xff]  ;;  %v1065_v11 = vpack.c.bf16 %v323_v9, %v322_v8  ;;  %v325_v12 = vld [vmem:[%s1399_s2 + $0x18] sm:$0xff]  ;;  %v30_v14 = vld [vmem:[#allocation2 + $0x8] sm:$0xff] }
  0x17   :  { %1060 = vmatpush3.bf16.xpose.msra.mxu0 %v1057_v3  ;;  %v1071_v13 = vpack.c.bf16 %v325_v12, %v324_v10  ;;  %v31_v15 = vld [vmem:[#allocation2 + $0x10] sm:$0xff]  ;;  %v32_v16 = vld [vmem:[#allocation2 + $0x18] sm:$0xff]  ;;  %v326_v17 = vld [vmem:[%s1399_s2 + $0x20] sm:$0xff] }
  0x18   :  { %1062 = vmatprep.subr.bf16.mxu0 %v1061_v6  ;;  %1113 = vmatprep.subr.msk.bf16.mxu1 %vm1234_vm1, %v1065_v11  ;;  %v327_v18 = vld [vmem:[%s1399_s2 + $0x28] sm:$0xff]  ;;  %v33_v19 = vld [vmem:[#allocation2 + $0x20] sm:$0xff]  ;;  %v35_v22 = vld [vmem:[#allocation2 + $0x30] sm:$0xff] }
  0x19   :  { %1121 = vmatpush3.bf16.xpose.msk.msra.mxu1 %vm1234_vm1, %v1065_v11  ;;  %v1077_v20 = vpack.c.bf16 %v327_v18, %v326_v17  ;;  %v34_v21 = vld [vmem:[#allocation2 + $0x28] sm:$0xff]  ;;  %v36_v23 = vld [vmem:[#allocation2 + $0x38] sm:$0xff]  ;;  %v328_v24 = vld [vmem:[%s1399_s2 + $0x30] sm:$0xff] }
  0x1a   :  { %1114 = vmatprep.subr.msk.bf16.mxu1 %vm1234_vm1, %v1071_v13  ;;  %v329_v25 = vld [vmem:[%s1399_s2 + $0x38] sm:$0xff]  ;;  %v37_v26 = vld [vmem:[#allocation2 + $0x40] sm:$0xff]  ;;  %v38_v28 = vld [vmem:[#allocation2 + $0x48] sm:$0xff] }
  0x1b   :  { %v1083_v27 = vpack.c.bf16 %v329_v25, %v328_v24  ;;  %v39_v29 = vld [vmem:[#allocation2 + $0x50] sm:$0xff]  ;;  %v40_v30 = vld [vmem:[#allocation2 + $0x58] sm:$0xff]  ;;  %v330_v31 = vld [vmem:[%s1399_s2 + $0x40] sm:$0xff] }
  0x1c   :  { %v331_v32 = vld [vmem:[%s1399_s2 + $0x48] sm:$0xff]  ;;  %v41_v33 = vld [vmem:[#allocation2 + $0x60] sm:$0xff]  ;;  %v43_v36 = vld [vmem:[#allocation2 + $0x70] sm:$0xff] }
  0x1d   :  { %v1089_v34 = vpack.c.bf16 %v331_v32, %v330_v31  ;;  %v42_v35 = vld [vmem:[#allocation2 + $0x68] sm:$0xff]  ;;  %v44_v37 = vld [vmem:[#allocation2 + $0x78] sm:$0xff]  ;;  %v332_v38 = vld [vmem:[%s1399_s2 + $0x50] sm:$0xff] }
  0x1e   :  { %v333_v39 = vld [vmem:[%s1399_s2 + $0x58] sm:$0xff]  ;;  %v45_v40 = vld [vmem:[#allocation2 + $0x80] sm:$0xff]  ;;  %v46_v42 = vld [vmem:[#allocation2 + $0x88] sm:$0xff] }
  0x1f   :  { %1064 = vmatpush3.bf16.xpose.msra.mxu0 %v1061_v6  ;;  %v1095_v41 = vpack.c.bf16 %v333_v39, %v332_v38  ;;  %v47_v43 = vld [vmem:[#allocation2 + $0x90] sm:$0xff]  ;;  %v48_v44 = vld [vmem:[#allocation2 + $0x98] sm:$0xff]  ;;  %v334_v45 = vld [vmem:[%s1399_s2 + $0x60] sm:$0xff] }
  0x20   :  { %1067 = vmatprep.subr.msk.bf16.mxu0 %vm1234_vm1, %v1065_v11  ;;  %v335_v46 = vld [vmem:[%s1399_s2 + $0x68] sm:$0xff]  ;;  %v49_v47 = vld [vmem:[#allocation2 + $0xa0] sm:$0xff]  ;;  %v51_v50 = vld [vmem:[#allocation2 + $0xb0] sm:$0xff] }
  0x21   :  { %1122 = vmatpush3.bf16.xpose.msk.msra.mxu1 %vm1234_vm1, %v1071_v13  ;;  %v1101_v48 = vpack.c.bf16 %v335_v46, %v334_v45  ;;  %v50_v49 = vld [vmem:[#allocation2 + $0xa8] sm:$0xff]  ;;  %v52_v51 = vld [vmem:[#allocation2 + $0xb8] sm:$0xff]  ;;  %v336_v52 = vld [vmem:[%s1399_s2 + $0x70] sm:$0xff] }
  0x22   :  { %1115 = vmatprep.subr.msk.bf16.mxu1 %vm1234_vm1, %v1077_v20  ;;  %v337_v53 = vld [vmem:[%s1399_s2 + $0x78] sm:$0xff]  ;;  %v53_v54 = vld [vmem:[#allocation2 + $0xc0] sm:$0xff]  ;;  %v54_v56 = vld [vmem:[#allocation2 + $0xc8] sm:$0xff]  ;;  %s1184_s2 = smov [#allocation5]  }
  0x23   :  { %v1107_v55 = vpack.c.bf16 %v337_v53, %v336_v52  ;;  %v55_v57 = vld [vmem:[#allocation2 + $0xd0] sm:$0xff]  ;;  %v56_v58 = vld [vmem:[#allocation2 + $0xd8] sm:$0xff]  ;;  %v57_v59 = vld [vmem:[#allocation2 + $0xe0] sm:$0xff]  ;;  %s777_s10 = sshll.u32 %s1184_s2, 4  ;;  %s778_s10 = int_to_ptr.vmem [resolvable:$true] %s777_s10 }
  0x24   :  { %v58_v60 = vld [vmem:[#allocation2 + $0xe8] sm:$0xff]  ;;  %v59_v61 = vld [vmem:[#allocation2 + $0xf0] sm:$0xff]  ;;  %v60_v62 = vld [vmem:[#allocation2 + $0xf8] sm:$0xff]  ;;  %s1155_s11 = scalar_lea.vmem %s778_s10, 4096  ;;  %p1160_p9 = scmp.lt.s32.totalorder %s778_s10, %s778_s10 }
  0x25   :  { %p1156_p8 = scmp.ne.s32.totalorder %s778_s10, %s1155_s11  ;;  %p1161_p10 = scmp.lt.s32.totalorder %s1155_s11, %s1155_s11 }
  0x26   :  { %930 = vmatmul.mubr.f32.vlgmr.msra.gmra.mrb[0].mxu0 %v30_v14 }
  0x27   :  { %932 = vmatprep.mubr.f32.mxu0 %v31_v15  ;;  %1070 = vmatpush3.bf16.xpose.msk.msra.mxu0 %vm1234_vm1, %v1065_v11  ;;  %p1162_p11 = por %p1161_p10, %p1160_p9 }
  0x28   :  { %1073 = vmatprep.subr.msk.bf16.mxu0 %vm1234_vm1, %v1071_v13 }
  0x29   :  { %1123 = vmatpush3.bf16.xpose.msk.msra.mxu1 %vm1234_vm1, %v1077_v20  ;;  %p1163_p12 = pnand %p1162_p11, %p1156_p8 }
  0x2a   :  { %933 = vmatmul.mubr.f32.gmra.mrb[2].mxu0 %v32_v16  ;;  %1116 = vmatprep.subr.msk.bf16.mxu1 %vm1234_vm1, %v1083_v27 }
  0x2b   :  { %935 = vmatprep.mubr.f32.mxu0 %v33_v19 }
  0x2e   :  { %936 = vmatmul.mubr.f32.gmra.mrb[4].mxu0 %v34_v21 }
  0x2f   :  { %938 = vmatprep.mubr.f32.mxu0 %v35_v22  ;;  %1076 = vmatpush3.bf16.xpose.msk.msra.mxu0 %vm1234_vm1, %v1071_v13 }
  0x30   :  { %1079 = vmatprep.subr.msk.bf16.mxu0 %vm1234_vm1, %v1077_v20 }
  0x31   :  { %1124 = vmatpush3.bf16.xpose.msk.msra.mxu1 %vm1234_vm1, %v1083_v27 }
  0x32   :  { %939 = vmatmul.mubr.f32.gmra.mrb[6].mxu0 %v36_v23  ;;  %1117 = vmatprep.subr.msk.bf16.mxu1 %vm1234_vm1, %v1089_v34 }
  0x33   :  { %941 = vmatprep.mubr.f32.mxu0 %v37_v26 }
  0x36   :  { %942 = vmatmul.mubr.f32.gmra.mrb[8].mxu0 %v38_v28 }
  0x37   :  { %944 = vmatprep.mubr.f32.mxu0 %v39_v29  ;;  %1082 = vmatpush3.bf16.xpose.msk.msra.mxu0 %vm1234_vm1, %v1077_v20 }
  0x38   :  { %1085 = vmatprep.subr.msk.bf16.mxu0 %vm1234_vm1, %v1083_v27 }
  0x39   :  { %1125 = vmatpush3.bf16.xpose.msk.msra.mxu1 %vm1234_vm1, %v1089_v34 }
  0x3a   :  { %945 = vmatmul.mubr.f32.gmra.mrb[10].mxu0 %v40_v30  ;;  %1118 = vmatprep.subr.msk.bf16.mxu1 %vm1234_vm1, %v1095_v41 }
  0x3b   :  { %947 = vmatprep.mubr.f32.mxu0 %v41_v33 }
  0x3e   :  { %948 = vmatmul.mubr.f32.gmra.mrb[12].mxu0 %v42_v35 }
  0x3f   :  { %950 = vmatprep.mubr.f32.mxu0 %v43_v36  ;;  %1088 = vmatpush3.bf16.xpose.msk.msra.mxu0 %vm1234_vm1, %v1083_v27 }
  0x40   :  { %1091 = vmatprep.subr.msk.bf16.mxu0 %vm1234_vm1, %v1089_v34 }
  0x41   :  { %1126 = vmatpush3.bf16.xpose.msk.msra.mxu1 %vm1234_vm1, %v1095_v41 }
  0x42   :  { %951 = vmatmul.mubr.f32.gmra.mrb[14].mxu0 %v44_v37  ;;  %1119 = vmatprep.subr.msk.bf16.mxu1 %vm1234_vm1, %v1101_v48 }
  0x43   :  { %953 = vmatprep.mubr.f32.mxu0 %v45_v40 }
  0x46   :  { %954 = vmatmul.mubr.f32.gmra.mrb[16].mxu0 %v46_v42 }
  0x47   :  { %956 = vmatprep.mubr.f32.mxu0 %v47_v43  ;;  %1094 = vmatpush3.bf16.xpose.msk.msra.mxu0 %vm1234_vm1, %v1089_v34 }
  0x48   :  { %1097 = vmatprep.subr.msk.bf16.mxu0 %vm1234_vm1, %v1095_v41 }
  0x49   :  { %1127 = vmatpush3.bf16.xpose.msk.msra.mxu1 %vm1234_vm1, %v1101_v48 }
  0x4a   :  { %957 = vmatmul.mubr.f32.gmra.mrb[18].mxu0 %v48_v44  ;;  %1120 = vmatprep.subr.msk.bf16.mxu1 %vm1234_vm1, %v1107_v55 }
  0x4b   :  { %959 = vmatprep.mubr.f32.mxu0 %v49_v47 }
  0x4e   :  { %960 = vmatmul.mubr.f32.gmra.mrb[20].mxu0 %v50_v49 }
  0x4f   :  { %962 = vmatprep.mubr.f32.mxu0 %v51_v50  ;;  %1100 = vmatpush3.bf16.xpose.msk.msra.mxu0 %vm1234_vm1, %v1095_v41 }
  0x50   :  { %1103 = vmatprep.subr.msk.bf16.mxu0 %vm1234_vm1, %v1101_v48 }
  0x51   :  { %1128 = vmatpush3.bf16.xpose.msk.msra.mxu1 %vm1234_vm1, %v1107_v55 }
  0x52   :  { %963 = vmatmul.mubr.f32.gmra.mrb[22].mxu0 %v52_v51 }
  0x53   :  { %965 = vmatprep.mubr.f32.mxu0 %v53_v54 }
  0x56   :  { %966 = vmatmul.mubr.f32.gmra.mrb[24].mxu0 %v54_v56 }
  0x57   :  { %968 = vmatprep.mubr.f32.mxu0 %v55_v57  ;;  %1106 = vmatpush3.bf16.xpose.msk.msra.mxu0 %vm1234_vm1, %v1101_v48 }
  0x58   :  { %1109 = vmatprep.subr.msk.bf16.mxu0 %vm1234_vm1, %v1107_v55 }
  0x5a   :  { %969 = vmatmul.mubr.f32.gmra.mrb[26].mxu0 %v56_v58 }
  0x5b   :  { %971 = vmatprep.mubr.f32.mxu0 %v57_v59 }
  0x5e   :  { %972 = vmatmul.mubr.f32.gmra.mrb[28].mxu0 %v58_v60 }
  0x5f   :  { %974 = vmatprep.mubr.f32.mxu0 %v59_v61  ;;  %1112 = vmatpush3.bf16.xpose.msk.msra.mxu0 %vm1234_vm1, %v1107_v55 }
  0x62   :  { %975 = vmatmul.mubr.f32.gmra.mrb[30].mxu0 %v60_v62 }
  0xf9   :  { %v931_v63 = vpop.f32.mrb[0].mxu0 }
  0xfa   :  { %v131_v0 = vpop.f32.mrb[1].mxu0  ;;  %v291_v2 = vmax.f32 %v931_v63, 0.0 }
  0xfb   :  { %v290_v1 = vmax.f32 %v131_v0, 0.0 }
  0xfd   :  { %v934_v3 = vpop.f32.mrb[2].mxu0  ;;  %1009 = vmatprep.mubr.msk.f32.mxu0 %vm338_vm0, %v290_v1 }
  0xfe   :  { %v141_v4 = vpop.f32.mrb[3].mxu0  ;;  %1010 = vmatmul.mubr.msk.f32.vlgmr.msra.gmra.mrb[32].mxu0 %vm338_vm0, %v291_v2  ;;  %v293_v6 = vmax.f32 %v934_v3, 0.0 }
  0xff   :  { %v292_v5 = vmax.f32 %v141_v4, 0.0 }
 0x101   :  { %v937_v8 = vpop.f32.mrb[4].mxu0  ;;  %1012 = vmatprep.mubr.msk.f32.mxu0 %vm338_vm0, %v292_v5 }
 0x102   :  { %v151_v9 = vpop.f32.mrb[5].mxu0  ;;  %1013 = vmatmul.mubr.msk.f32.gmra.mrb[34].mxu0 %vm338_vm0, %v293_v6  ;;  %v295_v10 = vmax.f32 %v937_v8, 0.0 }
 0x103   :  { %v294_v7 = vmax.f32 %v151_v9, 0.0 }
 0x105   :  { %v940_v11 = vpop.f32.mrb[6].mxu0  ;;  %1015 = vmatprep.mubr.msk.f32.mxu0 %vm338_vm0, %v294_v7 }
 0x106   :  { %v161_v12 = vpop.f32.mrb[7].mxu0  ;;  %1016 = vmatmul.mubr.msk.f32.gmra.mrb[36].mxu0 %vm338_vm0, %v295_v10  ;;  %v297_v14 = vmax.f32 %v940_v11, 0.0 }
 0x107   :  { %v296_v13 = vmax.f32 %v161_v12, 0.0 }
 0x109   :  { %v943_v15 = vpop.f32.mrb[8].mxu0  ;;  %1018 = vmatprep.mubr.msk.f32.mxu0 %vm338_vm0, %v296_v13 }
 0x10a   :  { %v171_v16 = vpop.f32.mrb[9].mxu0  ;;  %1019 = vmatmul.mubr.msk.f32.gmra.mrb[38].mxu0 %vm338_vm0, %v297_v14  ;;  %v299_v18 = vmax.f32 %v943_v15, 0.0 }
 0x10b   :  { %v298_v17 = vmax.f32 %v171_v16, 0.0 }
 0x10d   :  { %v946_v19 = vpop.f32.mrb[10].mxu0  ;;  %1021 = vmatprep.mubr.msk.f32.mxu0 %vm338_vm0, %v298_v17 }
 0x10e   :  { %v181_v20 = vpop.f32.mrb[11].mxu0  ;;  %1022 = vmatmul.mubr.msk.f32.gmra.mrb[40].mxu0 %vm338_vm0, %v299_v18  ;;  %v301_v22 = vmax.f32 %v946_v19, 0.0 }
 0x10f   :  { %v300_v21 = vmax.f32 %v181_v20, 0.0 }
 0x111   :  { %v949_v23 = vpop.f32.mrb[12].mxu0  ;;  %1024 = vmatprep.mubr.msk.f32.mxu0 %vm338_vm0, %v300_v21 }
 0x112   :  { %v191_v24 = vpop.f32.mrb[13].mxu0  ;;  %1025 = vmatmul.mubr.msk.f32.gmra.mrb[42].mxu0 %vm338_vm0, %v301_v22  ;;  %v303_v26 = vmax.f32 %v949_v23, 0.0 }
 0x113   :  { %v302_v25 = vmax.f32 %v191_v24, 0.0 }
 0x115   :  { %v952_v27 = vpop.f32.mrb[14].mxu0  ;;  %1027 = vmatprep.mubr.msk.f32.mxu1 %vm338_vm0, %v302_v25 }
 0x116   :  { %v201_v28 = vpop.f32.mrb[15].mxu0  ;;  %1028 = vmatmul.mubr.msk.f32.vlgmr.msra.gmra.mrb[0].mxu1 %vm338_vm0, %v303_v26  ;;  %v305_v30 = vmax.f32 %v952_v27, 0.0 }
 0x117   :  { %v304_v29 = vmax.f32 %v201_v28, 0.0 }
 0x119   :  { %v955_v31 = vpop.f32.mrb[16].mxu0  ;;  %1030 = vmatprep.mubr.msk.f32.mxu1 %vm338_vm0, %v304_v29 }
 0x11a   :  { %v211_v32 = vpop.f32.mrb[17].mxu0  ;;  %1031 = vmatmul.mubr.msk.f32.gmra.mrb[2].mxu1 %vm338_vm0, %v305_v30  ;;  %v307_v34 = vmax.f32 %v955_v31, 0.0 }
 0x11b   :  { %v306_v33 = vmax.f32 %v211_v32, 0.0 }
 0x11d   :  { %v958_v35 = vpop.f32.mrb[18].mxu0  ;;  %1033 = vmatprep.mubr.msk.f32.mxu1 %vm338_vm0, %v306_v33 }
 0x11e   :  { %v221_v36 = vpop.f32.mrb[19].mxu0  ;;  %1034 = vmatmul.mubr.msk.f32.gmra.mrb[4].mxu1 %vm338_vm0, %v307_v34  ;;  %v309_v38 = vmax.f32 %v958_v35, 0.0 }
 0x11f   :  { %v308_v37 = vmax.f32 %v221_v36, 0.0 }
 0x121   :  { %v961_v39 = vpop.f32.mrb[20].mxu0  ;;  %1036 = vmatprep.mubr.msk.f32.mxu1 %vm338_vm0, %v308_v37 }
 0x122   :  { %v231_v40 = vpop.f32.mrb[21].mxu0  ;;  %1037 = vmatmul.mubr.msk.f32.gmra.mrb[6].mxu1 %vm338_vm0, %v309_v38  ;;  %v311_v42 = vmax.f32 %v961_v39, 0.0 }
 0x123   :  { %v310_v41 = vmax.f32 %v231_v40, 0.0 }
 0x125   :  { %v964_v43 = vpop.f32.mrb[22].mxu0  ;;  %1039 = vmatprep.mubr.msk.f32.mxu1 %vm338_vm0, %v310_v41 }
 0x126   :  { %v241_v44 = vpop.f32.mrb[23].mxu0  ;;  %1040 = vmatmul.mubr.msk.f32.gmra.mrb[8].mxu1 %vm338_vm0, %v311_v42  ;;  %v313_v46 = vmax.f32 %v964_v43, 0.0 }
 0x127   :  { %v312_v45 = vmax.f32 %v241_v44, 0.0 }
 0x129   :  { %v967_v47 = vpop.f32.mrb[24].mxu0  ;;  %1042 = vmatprep.mubr.msk.f32.mxu1 %vm338_vm0, %v312_v45 }
 0x12a   :  { %v251_v48 = vpop.f32.mrb[25].mxu0  ;;  %1043 = vmatmul.mubr.msk.f32.gmra.mrb[10].mxu1 %vm338_vm0, %v313_v46  ;;  %v315_v50 = vmax.f32 %v967_v47, 0.0 }
 0x12b   :  { %v314_v49 = vmax.f32 %v251_v48, 0.0 }
 0x12d   :  { %v970_v51 = vpop.f32.mrb[26].mxu0  ;;  %1045 = vmatprep.mubr.msk.f32.mxu1 %vm338_vm0, %v314_v49 }
 0x12e   :  { %v261_v52 = vpop.f32.mrb[27].mxu0  ;;  %1046 = vmatmul.mubr.msk.f32.gmra.mrb[12].mxu1 %vm338_vm0, %v315_v50  ;;  %v317_v54 = vmax.f32 %v970_v51, 0.0 }
 0x12f   :  { %v316_v53 = vmax.f32 %v261_v52, 0.0 }
 0x131   :  { %v973_v55 = vpop.f32.mrb[28].mxu0  ;;  %1048 = vmatprep.mubr.msk.f32.mxu1 %vm338_vm0, %v316_v53 }
 0x132   :  { %v271_v56 = vpop.f32.mrb[29].mxu0  ;;  %1049 = vmatmul.mubr.msk.f32.gmra.mrb[14].mxu1 %vm338_vm0, %v317_v54  ;;  %v319_v58 = vmax.f32 %v973_v55, 0.0 }
 0x133   :  { %v318_v57 = vmax.f32 %v271_v56, 0.0 }
 0x135   :  { %v976_v59 = vpop.f32.mrb[30].mxu0  ;;  %1051 = vmatprep.mubr.msk.f32.mxu1 %vm338_vm0, %v318_v57 }
 0x136   :  { %v281_v60 = vpop.f32.mrb[31].mxu0  ;;  %1052 = vmatmul.mubr.msk.f32.gmra.mrb[16].mxu1 %vm338_vm0, %v319_v58  ;;  %v321_v62 = vmax.f32 %v976_v59, 0.0 }
 0x137   :  { %v320_v61 = vmax.f32 %v281_v60, 0.0 }
 0x139   :  { %1054 = vmatprep.mubr.msk.f32.mxu1 %vm338_vm0, %v320_v61 }
 0x13a   :  { %1055 = vmatmul.mubr.msk.f32.gmra.mrb[18].mxu1 %vm338_vm0, %v321_v62 }
 0x1d1   :  { %v1011_v63 = vpop.f32.mrb[32].mxu0 }
 0x1d2   :  { %v709_v0 = vmax.f32 %v1011_v63, 0.0  ;;  %v549_v1 = vpop.f32.mrb[33].mxu0 }
 0x1d3   :  { %v708_v2 = vmax.f32 %v549_v1, 0.0 }
 0x1d4   :  { %741 = vst [vmem:[#allocation5 + $0x8] sm:$0xff] %v709_v0 }
 0x1d5   :  { %740 = vst [vmem:[#allocation5] sm:$0xff] %v708_v2  ;;  %v1014_v3 = vpop.f32.mrb[34].mxu0 }
 0x1d6   :  { %v711_v4 = vmax.f32 %v1014_v3, 0.0  ;;  %v559_v5 = vpop.f32.mrb[35].mxu0 }
 0x1d7   :  { %v710_v6 = vmax.f32 %v559_v5, 0.0 }
 0x1d8   :  { %743 = vst [vmem:[#allocation5 + $0x18] sm:$0xff] %v711_v4 }
 0x1d9   :  { %742 = vst [vmem:[#allocation5 + $0x10] sm:$0xff] %v710_v6  ;;  %v1017_v8 = vpop.f32.mrb[36].mxu0 }
 0x1da   :  { %v713_v9 = vmax.f32 %v1017_v8, 0.0  ;;  %v569_v7 = vpop.f32.mrb[37].mxu0 }
 0x1db   :  { %v712_v10 = vmax.f32 %v569_v7, 0.0 }
 0x1dc   :  { %745 = vst [vmem:[#allocation5 + $0x28] sm:$0xff] %v713_v9 }
 0x1dd   :  { %744 = vst [vmem:[#allocation5 + $0x20] sm:$0xff] %v712_v10  ;;  %v1020_v11 = vpop.f32.mrb[38].mxu0 }
 0x1de   :  { %v715_v12 = vmax.f32 %v1020_v11, 0.0  ;;  %v579_v13 = vpop.f32.mrb[39].mxu0 }
 0x1df   :  { %v714_v14 = vmax.f32 %v579_v13, 0.0 }
 0x1e0   :  { %747 = vst [vmem:[#allocation5 + $0x38] sm:$0xff] %v715_v12 }
 0x1e1   :  { %746 = vst [vmem:[#allocation5 + $0x30] sm:$0xff] %v714_v14  ;;  %v1023_v15 = vpop.f32.mrb[40].mxu0 }
 0x1e2   :  { %v717_v16 = vmax.f32 %v1023_v15, 0.0  ;;  %v589_v17 = vpop.f32.mrb[41].mxu0 }
 0x1e3   :  { %v716_v18 = vmax.f32 %v589_v17, 0.0 }
 0x1e4   :  { %749 = vst [vmem:[#allocation5 + $0x48] sm:$0xff] %v717_v16 }
 0x1e5   :  { %748 = vst [vmem:[#allocation5 + $0x40] sm:$0xff] %v716_v18  ;;  %v1026_v19 = vpop.f32.mrb[42].mxu0 }
 0x1e6   :  { %v719_v20 = vmax.f32 %v1026_v19, 0.0  ;;  %v599_v21 = vpop.f32.mrb[43].mxu0 }
 0x1e7   :  { %v718_v22 = vmax.f32 %v599_v21, 0.0 }
 0x1e8   :  { %751 = vst [vmem:[#allocation5 + $0x58] sm:$0xff] %v719_v20 }
 0x1e9   :  { %750 = vst [vmem:[#allocation5 + $0x50] sm:$0xff] %v718_v22  ;;  %v1029_v23 = vpop.f32.mrb[0].mxu1 }
 0x1ea   :  { %v721_v24 = vmax.f32 %v1029_v23, 0.0  ;;  %v609_v25 = vpop.f32.mrb[1].mxu1 }
 0x1eb   :  { %v720_v26 = vmax.f32 %v609_v25, 0.0 }
 0x1ec   :  { %753 = vst [vmem:[#allocation5 + $0x68] sm:$0xff] %v721_v24 }
 0x1ed   :  { %752 = vst [vmem:[#allocation5 + $0x60] sm:$0xff] %v720_v26  ;;  %v1032_v27 = vpop.f32.mrb[2].mxu1 }
 0x1ee   :  { %v723_v28 = vmax.f32 %v1032_v27, 0.0  ;;  %v619_v29 = vpop.f32.mrb[3].mxu1 }
 0x1ef   :  { %v722_v30 = vmax.f32 %v619_v29, 0.0 }
 0x1f0   :  { %755 = vst [vmem:[#allocation5 + $0x78] sm:$0xff] %v723_v28 }
 0x1f1   :  { %754 = vst [vmem:[#allocation5 + $0x70] sm:$0xff] %v722_v30  ;;  %v1035_v31 = vpop.f32.mrb[4].mxu1 }
 0x1f2   :  { %v725_v32 = vmax.f32 %v1035_v31, 0.0  ;;  %v629_v33 = vpop.f32.mrb[5].mxu1 }
 0x1f3   :  { %v724_v34 = vmax.f32 %v629_v33, 0.0 }
 0x1f4   :  { %757 = vst [vmem:[#allocation5 + $0x88] sm:$0xff] %v725_v32 }
 0x1f5   :  { %756 = vst [vmem:[#allocation5 + $0x80] sm:$0xff] %v724_v34  ;;  %v1038_v35 = vpop.f32.mrb[6].mxu1 }
 0x1f6   :  { %v727_v36 = vmax.f32 %v1038_v35, 0.0  ;;  %v639_v37 = vpop.f32.mrb[7].mxu1 }
 0x1f7   :  { %v726_v38 = vmax.f32 %v639_v37, 0.0 }
 0x1f8   :  { %759 = vst [vmem:[#allocation5 + $0x98] sm:$0xff] %v727_v36 }
 0x1f9   :  { %758 = vst [vmem:[#allocation5 + $0x90] sm:$0xff] %v726_v38  ;;  %v1041_v39 = vpop.f32.mrb[8].mxu1 }
 0x1fa   :  { %v729_v40 = vmax.f32 %v1041_v39, 0.0  ;;  %v649_v41 = vpop.f32.mrb[9].mxu1 }
 0x1fb   :  { %v728_v42 = vmax.f32 %v649_v41, 0.0 }
 0x1fc   :  { %761 = vst [vmem:[#allocation5 + $0xa8] sm:$0xff] %v729_v40 }
 0x1fd   :  { %760 = vst [vmem:[#allocation5 + $0xa0] sm:$0xff] %v728_v42  ;;  %v1044_v43 = vpop.f32.mrb[10].mxu1 }
 0x1fe   :  { %v731_v44 = vmax.f32 %v1044_v43, 0.0  ;;  %v659_v45 = vpop.f32.mrb[11].mxu1 }
 0x1ff   :  { %v730_v46 = vmax.f32 %v659_v45, 0.0 }
 0x200   :  { %763 = vst [vmem:[#allocation5 + $0xb8] sm:$0xff] %v731_v44 }
 0x201   :  { %762 = vst [vmem:[#allocation5 + $0xb0] sm:$0xff] %v730_v46  ;;  %v1047_v47 = vpop.f32.mrb[12].mxu1 }
 0x202   :  { %v733_v48 = vmax.f32 %v1047_v47, 0.0  ;;  %v669_v49 = vpop.f32.mrb[13].mxu1 }
 0x203   :  { %v732_v50 = vmax.f32 %v669_v49, 0.0 }
 0x204   :  { %765 = vst [vmem:[#allocation5 + $0xc8] sm:$0xff] %v733_v48 }
 0x205   :  { %764 = vst [vmem:[#allocation5 + $0xc0] sm:$0xff] %v732_v50  ;;  %v1050_v51 = vpop.f32.mrb[14].mxu1 }
 0x206   :  { %v735_v52 = vmax.f32 %v1050_v51, 0.0  ;;  %v679_v53 = vpop.f32.mrb[15].mxu1 }
 0x207   :  { %v734_v54 = vmax.f32 %v679_v53, 0.0 }
 0x208   :  { %767 = vst [vmem:[#allocation5 + $0xd8] sm:$0xff] %v735_v52 }
 0x209   :  { %766 = vst [vmem:[#allocation5 + $0xd0] sm:$0xff] %v734_v54  ;;  %v1053_v55 = vpop.f32.mrb[16].mxu1 }
 0x20a   :  { %v737_v56 = vmax.f32 %v1053_v55, 0.0  ;;  %v689_v57 = vpop.f32.mrb[17].mxu1 }
 0x20b   :  { %v736_v58 = vmax.f32 %v689_v57, 0.0 }
 0x20c   :  { %769 = vst [vmem:[#allocation5 + $0xe8] sm:$0xff] %v737_v56 }
 0x20d   :  { %768 = vst [vmem:[#allocation5 + $0xe0] sm:$0xff] %v736_v58  ;;  %v1056_v59 = vpop.f32.mrb[18].mxu1 }
 0x20e   :  { %v739_v60 = vmax.f32 %v1056_v59, 0.0  ;;  %v699_v61 = vpop.f32.mrb[19].mxu1 }
 0x20f   :  { %v738_v62 = vmax.f32 %v699_v61, 0.0 }
 0x210   :  { %771 = vst [vmem:[#allocation5 + $0xf8] sm:$0xff] %v739_v60 }
 0x211   :  { %770 = vst [vmem:[#allocation5 + $0xf0] sm:$0xff] %v738_v62 }
 0x212   :  { %1166 = shalt.err (!%p1163_p12)
}
 0x213   :  { %s1167_s14 = scalar_lea.hbm %s1400_s3, 4096 }
 0x214   :  { %p1168_p13 = scmp.ne.s32.totalorder %s1400_s3, %s1167_s14  ;;  %p1171_p0 = scmp.lt.u32.totalorder %s1167_s14, %s1400_s3 }
 0x216   :  { %p1173_p1 = pnand %p1171_p0, %p1168_p13 }
 0x218   :  { %1176 = shalt.err (!%p1173_p1)
}
 0x219   :  { %783 = dma.vmem_to_hbm [thread:$0]  %s778_s10, 4096, %s1400_s3, [#allocation4], %s1182_s22, %s1182_s22, %s1183_s23  }
 0x21a   :  { %1179 = dma.done.wait [#allocation4], 4096  }
 0x21b   :  { %1180 = vsyncadd [#allocation4], 4294963200 }
 0x21c   :  { %787 = vsyncpa [#allocation3], 1 }
 0x21d   :  { %788 = vsyncpa [#allocation4], 1 }

</bundles_post_ra>
